<compile_context>
chip_gen: v6e
topology: v6e:2x2x1
jax: 0.10.0
libtpu: 0.0.40
codegen_flags: <defaults>
</compile_context>

<pallas_src>
import jax
import jax.numpy as jnp
from jax.experimental import pallas as pl
from jax.experimental.pallas import tpu as pltpu

STATE_DIM = 2     # MountainCarContinuous observation dim
ACTION_DIM = 1    # MountainCarContinuous action dim
HIDDEN = 64
PAD = 128         # padded hidden width (sublane axis of h1T/h2T, slab dims)
LANE = 128        # batch tile alignment (batch lives on the lane axis)
XA_ROWS = 8       # merged activation slab rows: 2 state features, 1 action, pad

# Parameter-slab column layout.  Columns >= HIDDEN of the slab multiply rows
# >= HIDDEN of h1T inside the fc2 matmul, and those rows are exactly zero, so
# the small parameter vectors stored there never leak into the matmul result.
COL_W1_0 = HIDDEN + 0   # fc1 weights for state feature 0 (hidden along sublanes)
COL_W1_1 = HIDDEN + 1   # fc1 weights for state feature 1
COL_B1   = HIDDEN + 2   # fc1 bias
COL_W2A  = HIDDEN + 3   # action row of fc2 weight
COL_B2   = HIDDEN + 4   # fc2 bias (+ 1.0 at row HIDDEN: bias-fold helper)
COL_W3   = HIDDEN + 5   # fc3 weight column (+ b3 at row HIDDEN: folded fc3 bias)
BIAS_ROW = HIDDEN       # h2T[BIAS_ROW, :] is forced to 1.0 by the b2 column


def _round_up(n, m):
    return ((n + m - 1) // m) * m


def _critic_kernel(xa_ref, p_ref, out_ref):
    # Merged activations, batch on lanes: row 0/1 = state features, row 2 = action.
    x0 = xa_ref[0:1, :]                              # (1, TB)
    x1 = xa_ref[1:2, :]
    ar = xa_ref[2:3, :]

    # Small parameter columns stashed in the matmul's dead lanes (rows >= HIDDEN
    # of these columns are zero except the bias-fold entries at BIAS_ROW).
    w1c0 = p_ref[:, COL_W1_0:COL_W1_0 + 1]           # (128, 1)
    w1c1 = p_ref[:, COL_W1_1:COL_W1_1 + 1]
    b1c  = p_ref[:, COL_B1:COL_B1 + 1]
    w2ac = p_ref[:, COL_W2A:COL_W2A + 1]
    b2c  = p_ref[:, COL_B2:COL_B2 + 1]
    w3c  = p_ref[:, COL_W3:COL_W3 + 1]

    # fc1 + relu (K=2): two VPU broadcast multiply-adds -> (128, TB).
    # Rows >= HIDDEN are exactly zero (their w1/b1 entries are zero).
    h1 = jnp.maximum(w1c0 * x0 + w1c1 * x1 + b1c, 0.0)

    # fc2 + relu: single 128x128 MXU product (w2h^T @ h1T); action & bias on VPU.
    # b2 column row BIAS_ROW is 1.0, so h2[BIAS_ROW, :] == 1.0 after relu and
    # carries the fc3 bias through the reduction below.
    h2 = jnp.maximum(
        jnp.dot(p_ref[...], h1, preferred_element_type=jnp.float32)
        + w2ac * ar + b2c,
        0.0)

    # fc3 (+ folded bias): sublane reduction on the XLU, lane-dense (1, TB) store.
    out_ref[...] = jnp.sum(h2 * w3c, axis=0, keepdims=True)


def _pick_tile(bp):
    # Single block up to 1024 batch columns: on single-TC v5e/v6e the grid is a
    # serial loop, so one big block amortizes the per-step overhead.  Beyond
    # that, two balanced lane-aligned blocks (one per v7x TensorCore), capped so
    # per-block (128, TB) f32 intermediates stay around 1 MiB.
    if bp <= 1024:
        return bp
    return min(_round_up(-(-bp // 2), LANE), 2048)


def critic_forward(x, a, param_slab, *, tile_b=None):
    """Critic forward pass. x: (B, STATE_DIM), a: (B, ACTION_DIM) -> (B, ACTION_DIM)."""
    assert ACTION_DIM == 1, "layout assumes a single action dim"
    B = x.shape[0]
    Bp = _round_up(max(B, 1), LANE)
    TB = _pick_tile(Bp) if tile_b is None else tile_b
    TB = _round_up(min(TB, Bp), LANE)                # lane-aligned batch tile
    Bp = _round_up(Bp, TB)                           # grid-divisible padded batch

    # One merged, lane-dense activation slab: one DMA per grid step.
    xa = jnp.zeros((XA_ROWS, Bp), jnp.float32)
    xa = xa.at[0:STATE_DIM, :B].set(x.astype(jnp.float32).T)
    xa = xa.at[STATE_DIM:STATE_DIM + ACTION_DIM, :B].set(a.astype(jnp.float32).T)

    out = pl.pallas_call(
        _critic_kernel,
        out_shape=jax.ShapeDtypeStruct((1, Bp), jnp.float32),
        grid=(Bp // TB,),
        in_specs=[
            pl.BlockSpec((XA_ROWS, TB), lambda i: (0, i)),   # activations
            pl.BlockSpec((PAD, PAD), lambda i: (0, 0)),      # resident params
        ],
        out_specs=pl.BlockSpec((1, TB), lambda i: (0, i)),   # lane-dense output
        compiler_params=pltpu.CompilerParams(
            dimension_semantics=("parallel",)),
    )(xa, param_slab)
    return out[0, :B].reshape(B, ACTION_DIM)


def init_params(key, state_dim=STATE_DIM, action_dim=ACTION_DIM, hidden=HIDDEN):
    """Deterministic init mimicking nn.Linear's U(-1/sqrt(fan_in), 1/sqrt(fan_in)).

    Returns math-layout params: w (in, out), b (out,).
    """
    ks = jax.random.split(key, 6)

    def lin(kw, kb, fan_in, fan_out):
        bound = 1.0 / jnp.sqrt(jnp.float32(fan_in))
        w = jax.random.uniform(kw, (fan_in, fan_out), jnp.float32, -bound, bound)
        b = jax.random.uniform(kb, (fan_out,), jnp.float32, -bound, bound)
        return w, b

    w1, b1 = lin(ks[0], ks[1], state_dim, hidden)
    w2, b2 = lin(ks[2], ks[3], hidden + action_dim, hidden)
    w3, b3 = lin(ks[4], ks[5], hidden, action_dim)
    return (w1, b1, w2, b2, w3, b3)


def pack_params(params):
    """Pack all parameters into one tile-aligned (128, 128) f32 slab."""
    w1, b1, w2, b2, w3, b3 = params
    assert ACTION_DIM == 1, "slab layout assumes a single action dim"

    slab = jnp.zeros((PAD, PAD), jnp.float32)
    # fc2 hidden weight, transposed: slab[k, j] = w2[j, k] for j,k < HIDDEN.
    slab = slab.at[:HIDDEN, :HIDDEN].set(w2[:HIDDEN, :].T)
    # Small params stashed in the matmul's dead lanes (>= HIDDEN).
    slab = slab.at[:HIDDEN, COL_W1_0].set(w1[0, :])
    slab = slab.at[:HIDDEN, COL_W1_1].set(w1[1, :])
    slab = slab.at[:HIDDEN, COL_B1].set(b1)
    slab = slab.at[:HIDDEN, COL_W2A].set(w2[HIDDEN, :])       # action row of fc2
    slab = slab.at[:HIDDEN, COL_B2].set(b2)
    slab = slab.at[BIAS_ROW, COL_B2].set(1.0)                  # bias-fold helper
    slab = slab.at[:HIDDEN, COL_W3].set(w3[:, 0])
    slab = slab.at[BIAS_ROW, COL_W3].set(b3[0])                # folded fc3 bias
    return slab


def critic_ref(x, a, params):
    """Plain-JAX reference matching the PyTorch module exactly."""
    w1, b1, w2, b2, w3, b3 = params
    h1 = jnp.maximum(x @ w1 + b1, 0.0)
    h2 = jnp.maximum(jnp.concatenate([h1, a], axis=1) @ w2 + b2, 0.0)
    return h2 @ w3 + b3


if __name__ == "__main__":
    key = jax.random.PRNGKey(0)
    k_p, k_x, k_a = jax.random.split(key, 3)

    params = init_params(k_p)
    slab = pack_params(params)

    # Small-batch check (single grid block, padded to one 128-lane tile).
    B_small = 8
    x = jax.random.normal(k_x, (B_small, STATE_DIM), dtype=jnp.float32)
    a = jax.random.uniform(k_a, (B_small, ACTION_DIM), dtype=jnp.float32,
                           minval=-1.0, maxval=1.0)
    out = jax.block_until_ready(critic_forward(x, a, slab))
    exp = critic_ref(x, a, params)
    assert out.shape == (B_small, ACTION_DIM), out.shape
    assert jnp.max(jnp.abs(out - exp)) < 1e-4, (out, exp)

    # Multi-block check (forced small tile -> 2 grid steps, batch padding).
    B_big = 200
    xb = jax.random.normal(k_x, (B_big, STATE_DIM), dtype=jnp.float32)
    ab = jax.random.uniform(k_a, (B_big, ACTION_DIM), dtype=jnp.float32,
                            minval=-1.0, maxval=1.0)
    out_b = jax.block_until_ready(critic_forward(xb, ab, slab, tile_b=128))
    exp_b = critic_ref(xb, ab, params)
    assert out_b.shape == (B_big, ACTION_DIM), out_b.shape
    assert jnp.max(jnp.abs(out_b - exp_b)) < 1e-4, (out_b, exp_b)

    print("KERNEL_OK")
</pallas_src>

<mosaic_0001>
module attributes {stable_mosaic.version = 11 : i64} {
  func.func @_critic_kernel(%arg0: i32, %arg1: memref<8x128xf32, #tpu.memory_space<vmem>>, %arg2: memref<128x128xf32, #tpu.memory_space<vmem>>, %arg3: memref<1x128xf32, #tpu.memory_space<vmem>>) attributes {dimension_semantics = [#tpu.dimension_semantics<parallel>], iteration_bounds = array<i64: 1>, scalar_prefetch = 0 : i64, scratch_operands = 0 : i64, tpu.core_type = #tpu.core_type<tc>, window_params = [{transform_indices = @transform_0, window_bounds = array<i64: 8, 128>}, {pipeline_mode = #tpu.pipeline_mode<synchronous>, transform_indices = @transform_1, window_bounds = array<i64: 128, 128>}, {transform_indices = @transform_2, window_bounds = array<i64: 1, 128>}]} {
    %c0 = arith.constant 0 : index
    %c0_0 = arith.constant 0 : index
    %0 = vector.load %arg1[%c0, %c0_0] : memref<8x128xf32, #tpu.memory_space<vmem>>, vector<1x128xf32>
    %c1 = arith.constant 1 : index
    %c0_1 = arith.constant 0 : index
    %1 = vector.load %arg1[%c1, %c0_1] : memref<8x128xf32, #tpu.memory_space<vmem>>, vector<1x128xf32>
    %c2 = arith.constant 2 : index
    %c0_2 = arith.constant 0 : index
    %2 = vector.load %arg1[%c2, %c0_2] : memref<8x128xf32, #tpu.memory_space<vmem>>, vector<1x128xf32>
    %c0_3 = arith.constant 0 : index
    %c64 = arith.constant 64 : index
    %3 = vector.load %arg2[%c0_3, %c64] : memref<128x128xf32, #tpu.memory_space<vmem>>, vector<128x1xf32>
    %c0_4 = arith.constant 0 : index
    %c65 = arith.constant 65 : index
    %4 = vector.load %arg2[%c0_4, %c65] : memref<128x128xf32, #tpu.memory_space<vmem>>, vector<128x1xf32>
    %c0_5 = arith.constant 0 : index
    %c66 = arith.constant 66 : index
    %5 = vector.load %arg2[%c0_5, %c66] : memref<128x128xf32, #tpu.memory_space<vmem>>, vector<128x1xf32>
    %c0_6 = arith.constant 0 : index
    %c67 = arith.constant 67 : index
    %6 = vector.load %arg2[%c0_6, %c67] : memref<128x128xf32, #tpu.memory_space<vmem>>, vector<128x1xf32>
    %c0_7 = arith.constant 0 : index
    %c68 = arith.constant 68 : index
    %7 = vector.load %arg2[%c0_7, %c68] : memref<128x128xf32, #tpu.memory_space<vmem>>, vector<128x1xf32>
    %c0_8 = arith.constant 0 : index
    %c69 = arith.constant 69 : index
    %8 = vector.load %arg2[%c0_8, %c69] : memref<128x128xf32, #tpu.memory_space<vmem>>, vector<128x1xf32>
    %9 = vector.broadcast %3 : vector<128x1xf32> to vector<128x128xf32>
    %10 = vector.broadcast %0 : vector<1x128xf32> to vector<128x128xf32>
    %11 = arith.mulf %9, %10 : vector<128x128xf32>
    %12 = vector.broadcast %4 : vector<128x1xf32> to vector<128x128xf32>
    %13 = vector.broadcast %1 : vector<1x128xf32> to vector<128x128xf32>
    %14 = arith.mulf %12, %13 : vector<128x128xf32>
    %15 = arith.addf %11, %14 : vector<128x128xf32>
    %16 = vector.broadcast %5 : vector<128x1xf32> to vector<128x128xf32>
    %17 = arith.addf %15, %16 : vector<128x128xf32>
    %cst = arith.constant 0.000000e+00 : f32
    %18 = vector.broadcast %cst : f32 to vector<128x128xf32>
    %19 = arith.maximumf %17, %18 : vector<128x128xf32>
    %c0_9 = arith.constant 0 : index
    %c0_10 = arith.constant 0 : index
    %20 = vector.load %arg2[%c0_9, %c0_10] : memref<128x128xf32, #tpu.memory_space<vmem>>, vector<128x128xf32>
    %cst_11 = arith.constant dense<0.000000e+00> : vector<128x128xf32>
    %21 = tpu.matmul %20, %19, %cst_11 {dimension_numbers = #tpu.dot_dimension_numbers<[1], [0], [0], [1], [0, 0, 1, 1], [], []>} : vector<128x128xf32>, vector<128x128xf32>, vector<128x128xf32> -> vector<128x128xf32>
    %22 = vector.broadcast %6 : vector<128x1xf32> to vector<128x128xf32>
    %23 = vector.broadcast %2 : vector<1x128xf32> to vector<128x128xf32>
    %24 = arith.mulf %22, %23 : vector<128x128xf32>
    %25 = arith.addf %21, %24 : vector<128x128xf32>
    %26 = vector.broadcast %7 : vector<128x1xf32> to vector<128x128xf32>
    %27 = arith.addf %25, %26 : vector<128x128xf32>
    %cst_12 = arith.constant 0.000000e+00 : f32
    %28 = vector.broadcast %cst_12 : f32 to vector<128x128xf32>
    %29 = arith.maximumf %27, %28 : vector<128x128xf32>
    %30 = vector.broadcast %8 : vector<128x1xf32> to vector<128x128xf32>
    %31 = arith.mulf %29, %30 : vector<128x128xf32>
    %cst_13 = arith.constant dense<0.000000e+00> : vector<128xf32>
    %32 = vector.multi_reduction <add>, %31, %cst_13 [0] : vector<128x128xf32> to vector<128xf32>
    %33 = vector.shape_cast %32 : vector<128xf32> to vector<1x128xf32>
    %c0_14 = arith.constant 0 : index
    %c0_15 = arith.constant 0 : index
    %34 = vector.load %arg3[%c0_14, %c0_15] : memref<1x128xf32, #tpu.memory_space<vmem>>, vector<1x128xf32>
    tpu.vector_store %arg3[%c0_14, %c0_15], %33 {strides = array<i32>} : memref<1x128xf32, #tpu.memory_space<vmem>>, vector<1x128xf32>,
    return
  }
  func.func @transform_0(%arg0: i32) -> (i32, i32) {
    %c0_i32 = arith.constant 0 : i32
    %c0_i32_0 = arith.constant 0 : i32
    return %c0_i32, %arg0 : i32, i32
  }
  func.func @transform_1(%arg0: i32) -> (i32, i32) {
    %c0_i32 = arith.constant 0 : i32
    %c0_i32_0 = arith.constant 0 : i32
    %c0_i32_1 = arith.constant 0 : i32
    return %c0_i32, %c0_i32_0 : i32, i32
  }
  func.func @transform_2(%arg0: i32) -> (i32, i32) {
    %c0_i32 = arith.constant 0 : i32
    %c0_i32_0 = arith.constant 0 : i32
    return %c0_i32, %arg0 : i32, i32
  }
}

</mosaic_0001>

<bundles_post_ra>
// kernel: tpu_custom_call.1
= control target key start
LH: loop header
LB: loop body
LE: loop exit
PB: predicated region body
PF: predicated region fallthrough
CT: control target
= control target key end

     0   :  { %7 = vsyncpa [#allocation3], 0  ;;  %s1397_s0 = inlined_call_operand.hbm [shape: f32[8,128], index: 0, kind: input, shape index: {}]   ;;  %s1398_s1 = inlined_call_operand.hbm [shape: f32[128,128], index: 1, kind: input, shape index: {}]   ;;  %s1399_s2 = inlined_call_operand.hbm [shape: f32[1,128], index: 2, kind: output, shape index: {}]  }
   0x1   :  { %8 = vsyncpa [#allocation6], 0 }
   0x2   :  { %9 = vsyncpa [#allocation4], 0  ;;  %s1025_s9 = smov [#allocation2]   ;;  %s1026_s11 = smov [#allocation5]  }
   0x3   :  { %s16_s10 = sshll.u32 %s1025_s9, 4  ;;  %s25_s12 = sshll.u32 %s1026_s11, 4  ;;  %s17_s10 = int_to_ptr.vmem [resolvable:$true] %s16_s10  ;;  %s26_s12 = int_to_ptr.vmem [resolvable:$true] %s25_s12 }
   0x4   :  { %s967_s13 = scalar_lea.vmem %s17_s10, 128  ;;  %p972_p1 = scmp.lt.s32.totalorder %s17_s10, %s17_s10 }
   0x5   :  { %p968_p0 = scmp.ne.s32.totalorder %s17_s10, %s967_s13  ;;  %p973_p2 = scmp.lt.s32.totalorder %s967_s13, %s967_s13 }
   0x7   :  { %p974_p3 = por %p973_p2, %p972_p1 }
   0x9   :  { %p975_p4 = pnand %p974_p3, %p968_p0 }
   0xb   :  { %978 = shalt.err (!%p975_p4)
}
   0xc   :  { %19 = dma.hbm_to_vmem [thread:$0]  %s1397_s0, 128, %s17_s10, [#allocation3]  }
   0xd   :  { %s987_s16 = scalar_lea.vmem %s26_s12, 2048  ;;  %p992_p6 = scmp.lt.s32.totalorder %s26_s12, %s26_s12 }
   0xe   :  { %p988_p5 = scmp.ne.s32.totalorder %s26_s12, %s987_s16  ;;  %p993_p7 = scmp.lt.s32.totalorder %s987_s16, %s987_s16 }
  0x10   :  { %p994_p8 = por %p993_p7, %p992_p6 }
  0x12   :  { %p995_p9 = pnand %p994_p8, %p988_p5 }
  0x14   :  { %998 = shalt.err (!%p995_p9)
}
  0x15   :  { %s1027_s17 = smov 128   ;;  %s1028_s18 = smov 8  }
  0x16   :  { %31 = dma.hbm_to_vmem [thread:$0]  %s1398_s1, 2048, %s26_s12, [#allocation6], %s1027_s17, %s1027_s17, %s1028_s18  }
  0x17   :  { %1019 = dma.done.wait [#allocation3], 128  }
  0x18   :  { %1020 = vsyncadd [#allocation3], 4294967168 }
  0x19   :  { %1021 = dma.done.wait [#allocation6], 2048  }
  0x1a   :  { %1022 = vsyncadd [#allocation6], 4294965248  ;;  %v1029_v0 = vmov 64   ;;  %v1057_v1 = vld [vmem:[#allocation5 + $0x10] sm:$0xff]  ;;  %v1059_v2 = vld [vmem:[#allocation5] sm:$0xff]  ;;  %v1030_v14 = vmov 65  }
  0x1b   :  { %931 = vset.pattern.permute.xlu1 %v1029_v0  ;;  %930 = vset.pattern.permute.xlu0 %v1029_v0  ;;  %v1063_v3 = vld [vmem:[#allocation5 + $0x18] sm:$0xff]  ;;  %v1065_v4 = vld [vmem:[#allocation5 + $0x8] sm:$0xff]  ;;  %v1068_v5 = vld [vmem:[#allocation5 + $0x40] sm:$0xff]  ;;  %v1031_v15 = vmov 66   ;;  %v1032_v19 = vmov 67   ;;  %v1033_v20 = vmov 69  }
  0x1c   :  { %69 = vperm.xlu1 %931, %v1057_v1   ;;  %59 = vperm.xlu0 %930, %v1059_v2   ;;  %v1073_v6 = vld [vmem:[#allocation5 + $0x28] sm:$0xff]  ;;  %v1075_v7 = vld [vmem:[#allocation5 + $0x20] sm:$0xff]  ;;  %v1079_v8 = vld [vmem:[#allocation5 + $0x38] sm:$0xff]  ;;  %v1034_v32 = vmov 68   ;;  %s1035_s0 = smov [#allocation7]  }
  0x1d   :  { %863 = vmatprep.mubr.f32.mxu0 %v1059_v2  ;;  %875 = vmatprep.mubr.f32.mxu1 %v1068_v5  ;;  %v1081_v9 = vld [vmem:[#allocation5 + $0x30] sm:$0xff]  ;;  %v1085_v10 = vld [vmem:[#allocation5 + $0x78] sm:$0xff]  ;;  %v1091_v12 = vld [vmem:[#allocation5 + $0x68] sm:$0xff]  ;;  %s786_s1 = sshll.u32 %s1035_s0, 4  ;;  %s787_s1 = int_to_ptr.vmem [resolvable:$true] %s786_s1 }
  0x1e   :  { %v1089_v11 = vld [vmem:[#allocation5 + $0x70] sm:$0xff]  ;;  %v1095_v13 = vld [vmem:[#allocation5 + $0x60] sm:$0xff]  ;;  %v1107_v17 = vld [vmem:[#allocation5 + $0x58] sm:$0xff]  ;;  %s999_s21 = scalar_lea.vmem %s787_s1, 16  ;;  %s1003_s22 = scalar_lea.vmem %s787_s1, 32 }
  0x1f   :  { %v1105_v16 = vld [vmem:[#allocation5 + $0x50] sm:$0xff]  ;;  %v1110_v18 = vld [vmem:[#allocation5 + $0x48] sm:$0xff]  ;;  %v1153_v22 = vld [vmem:[#allocation2] ss:$0 sm:$0xff]  ;;  %p1000_p10 = scmp.ne.s32.totalorder %s787_s1, %s999_s21  ;;  %p1004_p11 = scmp.lt.s32.totalorder %s787_s1, %s787_s1 }
  0x20   :  { %74 = vperm.xlu1 %931, %v1063_v3   ;;  %64 = vperm.xlu0 %930, %v1065_v4   ;;  %v1190_v41 = vld [vmem:[#allocation2 + $0x1] ss:$0 sm:$0xff]  ;;  %p1005_p12 = scmp.lt.s32.totalorder %s1003_s22, %s999_s21 }
  0x22   :  { %p1006_p13 = por %p1005_p12, %p1004_p11 }
  0x24   :  { %84 = vperm.xlu1 %931, %v1073_v6   ;;  %79 = vperm.xlu0 %930, %v1075_v7   ;;  %p1007_p0 = pnand %p1006_p13, %p1000_p10 }
  0x28   :  { %94 = vperm.xlu1 %931, %v1079_v8   ;;  %89 = vperm.xlu0 %930, %v1081_v9  }
  0x2c   :  { %134 = vperm.xlu1 %931, %v1085_v10   ;;  %99 = vperm.xlu0 %930, %v1068_v5  }
  0x30   :  { %129 = vperm.xlu1 %931, %v1089_v11   ;;  %124 = vperm.xlu0 %930, %v1091_v12  }
  0x34   :  { %932 = vset.pattern.permute.xlu1 %v1030_v14  ;;  %119 = vperm.xlu0 %930, %v1095_v13  }
  0x35   :  { %214 = vperm.xlu1 %932, %v1089_v11  }
  0x38   :  { %935 = vset.pattern.permute.xlu0 %v1031_v15 }
  0x39   :  { %210 = vperm.xlu1 %932, %v1091_v12   ;;  %314 = vperm.xlu0 %935, %v1089_v11  }
  0x3d   :  { %933 = vset.pattern.permute.xlu1 %v1031_v15  ;;  %310 = vperm.xlu0 %935, %v1091_v12  }
  0x3e   :  { %318 = vperm.xlu1 %933, %v1085_v10  }
  0x41   :  { %938 = vset.pattern.permute.xlu0 %v1030_v14 }
  0x42   :  { %934 = vset.pattern.permute.xlu1 %v1030_v14  ;;  %218 = vperm.xlu0 %938, %v1085_v10  }
  0x43   :  { %206 = vperm.xlu1 %934, %v1095_v13  }
  0x46   :  { %198 = vperm.xlu0 %938, %v1105_v16  }
  0x47   :  { %936 = vset.pattern.permute.xlu1 %v1029_v0 }
  0x48   :  { %114 = vperm.xlu1 %936, %v1107_v17  }
  0x4a   :  { %194 = vperm.xlu0 %938, %v1110_v18  }
  0x4c   :  { %937 = vset.pattern.permute.xlu1 %v1030_v14 }
  0x4d   :  { %202 = vperm.xlu1 %937, %v1107_v17  }
  0x4e   :  { %190 = vperm.xlu0 %938, %v1068_v5  }
  0x51   :  { %939 = vset.pattern.permute.xlu1 %v1029_v0 }
  0x52   :  { %109 = vperm.xlu1 %939, %v1105_v16   ;;  %186 = vperm.xlu0 %938, %v1079_v8  }
  0x56   :  { %940 = vset.pattern.permute.xlu1 %v1031_v15  ;;  %182 = vperm.xlu0 %938, %v1081_v9  }
  0x57   :  { %306 = vperm.xlu1 %940, %v1095_v13  }
  0x5a   :  { %178 = vperm.xlu0 %938, %v1073_v6  }
  0x5b   :  { %941 = vset.pattern.permute.xlu1 %v1029_v0 }
  0x5c   :  { %104 = vperm.xlu1 %941, %v1110_v18  }
  0x5e   :  { %174 = vperm.xlu0 %938, %v1075_v7  }
  0x60   :  { %942 = vset.pattern.permute.xlu1 %v1031_v15 }
  0x61   :  { %302 = vperm.xlu1 %942, %v1107_v17  }
  0x62   :  { %170 = vperm.xlu0 %938, %v1063_v3  }
  0x65   :  { %298 = vperm.xlu1 %942, %v1105_v16  }
  0x66   :  { %166 = vperm.xlu0 %938, %v1057_v1  }
  0x69   :  { %294 = vperm.xlu1 %942, %v1110_v18  }
  0x6a   :  { %162 = vperm.xlu0 %938, %v1065_v4  }
  0x6d   :  { %290 = vperm.xlu1 %942, %v1068_v5  }
  0x6e   :  { %158 = vperm.xlu0 %938, %v1059_v2  }
  0x71   :  { %286 = vperm.xlu1 %942, %v1079_v8  }
  0x72   :  { %943 = vset.pattern.permute.xlu0 %v1031_v15 }
  0x73   :  { %262 = vperm.xlu0 %943, %v1065_v4  }
  0x75   :  { %282 = vperm.xlu1 %942, %v1081_v9  }
  0x77   :  { %945 = vset.pattern.permute.xlu0 %v1032_v19 }
  0x78   :  { %358 = vperm.xlu0 %945, %v1065_v4  }
  0x79   :  { %278 = vperm.xlu1 %942, %v1073_v6  }
  0x7c   :  { %370 = vperm.xlu0 %945, %v1075_v7  }
  0x7d   :  { %274 = vperm.xlu1 %942, %v1075_v7  }
  0x80   :  { %378 = vperm.xlu0 %945, %v1081_v9  }
  0x81   :  { %270 = vperm.xlu1 %942, %v1063_v3  }
  0x84   :  { %386 = vperm.xlu0 %945, %v1068_v5  }
  0x85   :  { %266 = vperm.xlu1 %942, %v1057_v1  }
  0x88   :  { %394 = vperm.xlu0 %945, %v1105_v16  }
  0x89   :  { %258 = vperm.xlu1 %942, %v1059_v2  }
  0x8c   :  { %402 = vperm.xlu0 %945, %v1095_v13  }
  0x8d   :  { %944 = vset.pattern.permute.xlu1 %v1032_v19 }
  0x8e   :  { %354 = vperm.xlu1 %944, %v1059_v2  }
  0x90   :  { %410 = vperm.xlu0 %945, %v1089_v11  }
  0x92   :  { %362 = vperm.xlu1 %944, %v1057_v1  }
  0x94   :  { %947 = vset.pattern.permute.xlu0 %v1033_v20 }
  0x95   :  { %679 = vperm.xlu0 %947, %v1059_v2  }
  0x96   :  { %366 = vperm.xlu1 %944, %v1063_v3  }
  0x97   :  { %v1151_v21 = vpop.permute.xlu1 %69  ;;  %v60_v23 = vpop.permute.xlu0 %59 }
  0x98   :  { %v1156_v24 = vmul.f32 %v1153_v22, %v60_v23 }
  0x99   :  { %695 = vperm.xlu0 %947, %v1075_v7  }
  0x9a   :  { %374 = vperm.xlu1 %944, %v1073_v6  }
  0x9b   :  { %v1160_v25 = vpop.permute.xlu1 %74  ;;  %v65_v26 = vpop.permute.xlu0 %64 }
  0x9c   :  { %v1163_v27 = vmul.f32 %v1153_v22, %v65_v26 }
  0x9d   :  { %707 = vperm.xlu0 %947, %v1079_v8  }
  0x9e   :  { %382 = vperm.xlu1 %944, %v1079_v8  }
  0x9f   :  { %v1167_v28 = vpop.permute.xlu1 %84  ;;  %v1169_v29 = vpop.permute.xlu0 %79 }
  0xa1   :  { %719 = vperm.xlu0 %947, %v1105_v16  }
  0xa2   :  { %390 = vperm.xlu1 %944, %v1110_v18  }
  0xa3   :  { %v1173_v30 = vpop.permute.xlu1 %94  ;;  %v1175_v31 = vpop.permute.xlu0 %89 }
  0xa5   :  { %954 = vset.pattern.permute.xlu0 %v1034_v32 }
  0xa6   :  { %398 = vperm.xlu1 %944, %v1107_v17   ;;  %583 = vperm.xlu0 %954, %v1059_v2  }
  0xa7   :  { %v135_v33 = vpop.permute.xlu1 %134  ;;  %v1180_v34 = vpop.permute.xlu0 %99 }
  0xa8   :  { %v156_v48 = vmul.f32 %v1153_v22, %v135_v33 }
  0xaa   :  { %406 = vperm.xlu1 %944, %v1091_v12   ;;  %595 = vperm.xlu0 %954, %v1063_v3  }
  0xab   :  { %v130_v35 = vpop.permute.xlu1 %129  ;;  %v125_v36 = vpop.permute.xlu0 %124 }
  0xac   :  { %v155_v45 = vmul.f32 %v1153_v22, %v130_v35  ;;  %v154_v49 = vmul.f32 %v1153_v22, %v125_v36 }
  0xae   :  { %414 = vperm.xlu1 %944, %v1085_v10   ;;  %603 = vperm.xlu0 %954, %v1073_v6  }
  0xaf   :  { %v120_v37 = vpop.permute.xlu0 %119 }
  0xb0   :  { %v215_v38 = vpop.permute.xlu1 %214  ;;  %v153_v23 = vmul.f32 %v1153_v22, %v120_v37 }
  0xb1   :  { %v239_v44 = vmul.f32 %v1190_v41, %v215_v38 }
  0xb2   :  { %946 = vset.pattern.permute.xlu1 %v1034_v32  ;;  %615 = vperm.xlu0 %954, %v1068_v5  }
  0xb3   :  { %587 = vperm.xlu1 %946, %v1065_v4   ;;  %v255_v50 = vadd.f32 %v239_v44, %v155_v45 }
  0xb4   :  { %v211_v39 = vpop.permute.xlu1 %210  ;;  %v315_v40 = vpop.permute.xlu0 %314 }
  0xb5   :  { %v238_v46 = vmul.f32 %v1190_v41, %v211_v39  ;;  %v335_v56 = vadd.f32 %v315_v40, %v255_v50 }
  0xb6   :  { %627 = vperm.xlu0 %954, %v1107_v17  }
  0xb7   :  { %591 = vperm.xlu1 %946, %v1057_v1   ;;  %v254_v53 = vadd.f32 %v238_v46, %v154_v49  ;;  %v351_v62 = vmax.f32 %v335_v56, 0.0 }
  0xb8   :  { %v311_v42 = vpop.permute.xlu0 %310 }
  0xb9   :  { %v319_v43 = vpop.permute.xlu1 %318  ;;  %v334_v59 = vadd.f32 %v311_v42, %v254_v53 }
  0xba   :  { %639 = vperm.xlu0 %954, %v1089_v11  }
  0xbb   :  { %599 = vperm.xlu1 %946, %v1075_v7   ;;  %v350_v63 = vmax.f32 %v334_v59, 0.0 }
  0xbd   :  { %v219_v47 = vpop.permute.xlu0 %218 }
  0xbe   :  { %v240_v51 = vmul.f32 %v1190_v41, %v219_v47  ;;  %v207_v52 = vpop.permute.xlu1 %206  ;;  %957 = vset.pattern.permute.xlu0 %v1033_v20 }
  0xbf   :  { %948 = vset.pattern.permute.xlu1 %v1033_v20  ;;  %731 = vperm.xlu0 %957, %v1091_v12   ;;  %v237_v14 = vmul.f32 %v1190_v41, %v207_v52 }
  0xc0   :  { %v256_v54 = vadd.f32 %v240_v51, %v156_v48  ;;  %683 = vperm.xlu1 %948, %v1065_v4  }
  0xc1   :  { %v199_v55 = vpop.permute.xlu0 %198  ;;  %v253_v33 = vadd.f32 %v237_v14, %v153_v23 }
  0xc2   :  { %v336_v57 = vadd.f32 %v319_v43, %v256_v54  ;;  %v235_v44 = vmul.f32 %v1190_v41, %v199_v55 }
  0xc3   :  { %v115_v58 = vpop.permute.xlu1 %114 }
  0xc4   :  { %v352_v60 = vmax.f32 %v336_v57, 0.0  ;;  %687 = vperm.xlu1 %948, %v1057_v1   ;;  %v152_v37 = vmul.f32 %v1153_v22, %v115_v58 }
  0xc5   :  { %v195_v61 = vpop.permute.xlu0 %194 }
  0xc6   :  { %831 = vmatprep.subr.mxu0 %v352_v60  ;;  %887 = vmatprep.subr.mxu1 %v352_v60  ;;  %v234_v54 = vmul.f32 %v1190_v41, %v195_v61 }
  0xc7   :  { %832 = vmatpush3.msra.mxu0 %v352_v60  ;;  %903 = vmatpush3.msra.mxu1 %v352_v60 }
  0xc8   :  { %v203_v0 = vpop.permute.xlu1 %202  ;;  %833 = vmatprep.subr.mxu0 %v351_v62  ;;  %888 = vmatprep.subr.mxu1 %v351_v62 }
  0xc9   :  { %v191_v2 = vpop.permute.xlu0 %190  ;;  %834 = vmatpush3.msra.mxu0 %v351_v62  ;;  %904 = vmatpush3.msra.mxu1 %v351_v62  ;;  %v236_v40 = vmul.f32 %v1190_v41, %v203_v0  ;;  %v149_v62 = vmul.f32 %v1153_v22, %v1180_v34  ;;  %v148_v34 = vmul.f32 %v1153_v22, %v1173_v30 }
  0xca   :  { %835 = vmatprep.subr.mxu0 %v350_v63  ;;  %889 = vmatprep.subr.mxu1 %v350_v63  ;;  %v233_v55 = vmul.f32 %v1190_v41, %v191_v2  ;;  %v147_v30 = vmul.f32 %v1153_v22, %v1175_v31 }
  0xcb   :  { %836 = vmatpush3.msra.mxu0 %v350_v63  ;;  %905 = vmatpush3.msra.mxu1 %v350_v63  ;;  %v252_v46 = vadd.f32 %v236_v40, %v152_v37 }
  0xcc   :  { %691 = vperm.xlu1 %948, %v1063_v3  }
  0xcd   :  { %v110_v15 = vpop.permute.xlu1 %109  ;;  %v187_v19 = vpop.permute.xlu0 %186 }
  0xce   :  { %v151_v45 = vmul.f32 %v1153_v22, %v110_v15  ;;  %v232_v2 = vmul.f32 %v1190_v41, %v187_v19  ;;  %v249_v15 = vadd.f32 %v233_v55, %v149_v62 }
  0xd0   :  { %949 = vset.pattern.permute.xlu1 %v1034_v32  ;;  %v251_v52 = vadd.f32 %v235_v44, %v151_v45 }
  0xd1   :  { %v1210_v26 = vpop.permute.xlu0 %182  ;;  %607 = vperm.xlu1 %949, %v1081_v9  }
  0xd2   :  { %v307_v35 = vpop.permute.xlu1 %306  ;;  %v231_v19 = vmul.f32 %v1190_v41, %v1210_v26 }
  0xd3   :  { %v333_v36 = vadd.f32 %v307_v35, %v253_v33 }
  0xd5   :  { %v349_v38 = vmax.f32 %v333_v36, 0.0  ;;  %v1213_v39 = vpop.permute.xlu0 %178  ;;  %611 = vperm.xlu1 %949, %v1079_v8  }
  0xd6   :  { %v230_v45 = vmul.f32 %v1190_v41, %v1213_v39 }
  0xd7   :  { %v105_v42 = vpop.permute.xlu1 %104  ;;  %837 = vmatprep.subr.mxu0 %v349_v38  ;;  %890 = vmatprep.subr.mxu1 %v349_v38 }
  0xd8   :  { %838 = vmatpush3.msra.mxu0 %v349_v38  ;;  %906 = vmatpush3.msra.mxu1 %v349_v38  ;;  %v150_v50 = vmul.f32 %v1153_v22, %v105_v42  ;;  %v248_v42 = vadd.f32 %v232_v2, %v148_v34 }
  0xd9   :  { %v1218_v43 = vpop.permute.xlu0 %174  ;;  %950 = vset.pattern.permute.xlu1 %v1033_v20 }
  0xda   :  { %699 = vperm.xlu1 %950, %v1073_v6   ;;  %v250_v59 = vadd.f32 %v234_v54, %v150_v50  ;;  %v229_v31 = vmul.f32 %v1190_v41, %v1218_v43 }
  0xdc   :  { %v303_v47 = vpop.permute.xlu1 %302 }
  0xdd   :  { %v332_v48 = vadd.f32 %v303_v47, %v252_v46  ;;  %v1224_v49 = vpop.permute.xlu0 %170  ;;  %v247_v46 = vadd.f32 %v231_v19, %v147_v30 }
  0xde   :  { %703 = vperm.xlu1 %950, %v1081_v9  }
  0xdf   :  { %v348_v51 = vmax.f32 %v332_v48, 0.0 }
  0xe0   :  { %v299_v53 = vpop.permute.xlu1 %298 }
  0xe1   :  { %v331_v56 = vadd.f32 %v299_v53, %v251_v52  ;;  %v1229_v57 = vpop.permute.xlu0 %166  ;;  %839 = vmatprep.subr.mxu0 %v348_v51  ;;  %891 = vmatprep.subr.mxu1 %v348_v51 }
  0xe2   :  { %840 = vmatpush3.msra.mxu0 %v348_v51  ;;  %907 = vmatpush3.msra.mxu1 %v348_v51 }
  0xe3   :  { %v347_v58 = vmax.f32 %v331_v56, 0.0  ;;  %951 = vset.pattern.permute.xlu1 %v1034_v32  ;;  %v144_v56 = vmul.f32 %v1153_v22, %v1160_v25 }
  0xe4   :  { %v295_v60 = vpop.permute.xlu1 %294  ;;  %619 = vperm.xlu1 %951, %v1110_v18  }
  0xe5   :  { %v330_v61 = vadd.f32 %v295_v60, %v250_v59  ;;  %v163_v63 = vpop.permute.xlu0 %162  ;;  %841 = vmatprep.subr.mxu0 %v347_v58  ;;  %892 = vmatprep.subr.mxu1 %v347_v58  ;;  %v143_v60 = vmul.f32 %v1153_v22, %v1151_v21 }
  0xe6   :  { %v226_v0 = vmul.f32 %v1190_v41, %v163_v63  ;;  %842 = vmatpush3.msra.mxu0 %v347_v58  ;;  %908 = vmatpush3.msra.mxu1 %v347_v58 }
  0xe7   :  { %v346_v14 = vmax.f32 %v330_v61, 0.0 }
  0xe8   :  { %v291_v23 = vpop.permute.xlu1 %290  ;;  %v1239_v33 = vadd.f32 %v226_v0, %v1163_v27  ;;  %623 = vperm.xlu1 %951, %v1105_v16  }
  0xe9   :  { %v329_v35 = vadd.f32 %v291_v23, %v249_v15  ;;  %v159_v36 = vpop.permute.xlu0 %158  ;;  %843 = vmatprep.subr.mxu0 %v346_v14  ;;  %893 = vmatprep.subr.mxu1 %v346_v14 }
  0xea   :  { %v225_v38 = vmul.f32 %v1190_v41, %v159_v36  ;;  %844 = vmatpush3.msra.mxu0 %v346_v14  ;;  %909 = vmatpush3.msra.mxu1 %v346_v14 }
  0xeb   :  { %v345_v40 = vmax.f32 %v329_v35, 0.0 }
  0xec   :  { %v287_v27 = vpop.permute.xlu1 %286  ;;  %v1248_v37 = vadd.f32 %v225_v38, %v1156_v24  ;;  %952 = vset.pattern.permute.xlu1 %v1033_v20  ;;  %v146_v24 = vmul.f32 %v1153_v22, %v1167_v28  ;;  %v228_v28 = vmul.f32 %v1190_v41, %v1224_v49 }
  0xed   :  { %v328_v44 = vadd.f32 %v287_v27, %v248_v42  ;;  %845 = vmatprep.subr.mxu0 %v345_v40  ;;  %894 = vmatprep.subr.mxu1 %v345_v40 }
  0xee   :  { %846 = vmatpush3.msra.mxu0 %v345_v40  ;;  %910 = vmatpush3.msra.mxu1 %v345_v40  ;;  %v246_v51 = vadd.f32 %v230_v45, %v146_v24  ;;  %v244_v49 = vadd.f32 %v228_v28, %v144_v56  ;;  %v263_v25 = vpop.permute.xlu0 %262 }
  0xef   :  { %v344_v26 = vmax.f32 %v328_v44, 0.0  ;;  %711 = vperm.xlu1 %952, %v1068_v5   ;;  %v145_v5 = vmul.f32 %v1153_v22, %v1169_v29  ;;  %v227_v29 = vmul.f32 %v1190_v41, %v1229_v57  ;;  %v322_v41 = vadd.f32 %v263_v25, %v1239_v33 }
  0xf0   :  { %v283_v47 = vpop.permute.xlu1 %282 }
  0xf1   :  { %v327_v48 = vadd.f32 %v283_v47, %v247_v46  ;;  %847 = vmatprep.subr.mxu0 %v344_v26  ;;  %895 = vmatprep.subr.mxu1 %v344_v26  ;;  %v245_v54 = vadd.f32 %v229_v31, %v145_v5  ;;  %v243_v63 = vadd.f32 %v227_v29, %v143_v60  ;;  %v338_v22 = vmax.f32 %v322_v41, 0.0  ;;  %v1344_v31 = vld [vmem:[#allocation2 + $0x2] ss:$0 sm:$0xff] }
  0xf2   :  { %848 = vmatpush3.msra.mxu0 %v344_v26  ;;  %911 = vmatpush3.msra.mxu1 %v344_v26 }
  0xf3   :  { %v343_v50 = vmax.f32 %v327_v48, 0.0  ;;  %715 = vperm.xlu1 %952, %v1110_v18  }
  0xf4   :  { %v279_v39 = vpop.permute.xlu1 %278 }
  0xf5   :  { %v326_v52 = vadd.f32 %v279_v39, %v246_v51  ;;  %849 = vmatprep.subr.mxu0 %v343_v50  ;;  %896 = vmatprep.subr.mxu1 %v343_v50 }
  0xf6   :  { %850 = vmatpush3.msra.mxu0 %v343_v50  ;;  %912 = vmatpush3.msra.mxu1 %v343_v50 }
  0xf7   :  { %v342_v53 = vmax.f32 %v326_v52, 0.0  ;;  %953 = vset.pattern.permute.xlu1 %v1034_v32 }
  0xf8   :  { %v275_v43 = vpop.permute.xlu1 %274  ;;  %631 = vperm.xlu1 %953, %v1095_v13  }
  0xf9   :  { %v325_v55 = vadd.f32 %v275_v43, %v245_v54  ;;  %851 = vmatprep.subr.mxu0 %v342_v53  ;;  %897 = vmatprep.subr.mxu1 %v342_v53 }
  0xfa   :  { %852 = vmatpush3.msra.mxu0 %v342_v53  ;;  %913 = vmatpush3.msra.mxu1 %v342_v53 }
  0xfb   :  { %v341_v58 = vmax.f32 %v325_v55, 0.0 }
  0xfc   :  { %v271_v59 = vpop.permute.xlu1 %270  ;;  %635 = vperm.xlu1 %953, %v1091_v12  }
  0xfd   :  { %v324_v62 = vadd.f32 %v271_v59, %v244_v49  ;;  %853 = vmatprep.subr.mxu0 %v341_v58  ;;  %898 = vmatprep.subr.mxu1 %v341_v58 }
  0xfe   :  { %854 = vmatpush3.msra.mxu0 %v341_v58  ;;  %914 = vmatpush3.msra.mxu1 %v341_v58 }
  0xff   :  { %v340_v61 = vmax.f32 %v324_v62, 0.0 }
 0x100   :  { %v267_v0 = vpop.permute.xlu1 %266  ;;  %955 = vset.pattern.permute.xlu1 %v1033_v20 }
 0x101   :  { %v323_v57 = vadd.f32 %v267_v0, %v243_v63  ;;  %855 = vmatprep.subr.mxu0 %v340_v61  ;;  %899 = vmatprep.subr.mxu1 %v340_v61 }
 0x102   :  { %856 = vmatpush3.msra.mxu0 %v340_v61  ;;  %915 = vmatpush3.msra.mxu1 %v340_v61 }
 0x103   :  { %v339_v2 = vmax.f32 %v323_v57, 0.0  ;;  %723 = vperm.xlu1 %955, %v1107_v17  }
 0x104   :  { %v259_v21 = vpop.permute.xlu1 %258 }
 0x105   :  { %v321_v14 = vadd.f32 %v259_v21, %v1248_v37  ;;  %857 = vmatprep.subr.mxu0 %v339_v2  ;;  %900 = vmatprep.subr.mxu1 %v339_v2 }
 0x106   :  { %858 = vmatpush3.msra.mxu0 %v339_v2  ;;  %916 = vmatpush3.msra.mxu1 %v339_v2 }
 0x107   :  { %v337_v15 = vmax.f32 %v321_v14, 0.0  ;;  %859 = vmatprep.subr.mxu0 %v338_v22  ;;  %901 = vmatprep.subr.mxu1 %v338_v22 }
 0x108   :  { %860 = vmatpush3.msra.mxu0 %v338_v22  ;;  %917 = vmatpush3.msra.mxu1 %v338_v22 }
 0x109   :  { %861 = vmatprep.subr.mxu0 %v337_v15  ;;  %902 = vmatprep.subr.mxu1 %v337_v15 }
 0x10a   :  { %862 = vmatpush3.msra.mxu0 %v337_v15  ;;  %918 = vmatpush3.msra.mxu1 %v337_v15 }
 0x10b   :  { %864 = vmatmul.mubr.f32.vlgmr.msra.gmra.mxu0 %v1065_v4  ;;  %876 = vmatmul.mubr.f32.vlgmr.msra.gmra.mxu1 %v1110_v18 }
 0x10c   :  { %866 = vmatprep.mubr.f32.mxu0 %v1057_v1  ;;  %878 = vmatprep.mubr.f32.mxu1 %v1105_v16  ;;  %v355_v1 = vpop.permute.xlu1 %354 }
 0x10d   :  { %727 = vperm.xlu1 %955, %v1095_v13   ;;  %v421_v5 = vmul.f32 %v1344_v31, %v355_v1 }
 0x10f   :  { %867 = vmatmul.mubr.f32.gmra.mxu0 %v1063_v3  ;;  %879 = vmatmul.mubr.f32.gmra.mxu1 %v1107_v17 }
 0x110   :  { %869 = vmatprep.mubr.f32.mxu0 %v1075_v7  ;;  %881 = vmatprep.mubr.f32.mxu1 %v1095_v13  ;;  %v363_v3 = vpop.permute.xlu1 %362 }
 0x111   :  { %956 = vset.pattern.permute.xlu1 %v1034_v32  ;;  %v423_v60 = vmul.f32 %v1344_v31, %v363_v3 }
 0x112   :  { %643 = vperm.xlu1 %956, %v1085_v10  }
 0x113   :  { %870 = vmatmul.mubr.f32.gmra.mxu0 %v1073_v6  ;;  %882 = vmatmul.mubr.f32.gmra.mxu1 %v1091_v12 }
 0x114   :  { %872 = vmatprep.mubr.f32.mxu0 %v1081_v9  ;;  %884 = vmatprep.mubr.f32.mxu1 %v1089_v11  ;;  %v367_v4 = vpop.permute.xlu1 %366 }
 0x115   :  { %v424_v55 = vmul.f32 %v1344_v31, %v367_v4 }
 0x116   :  { %958 = vset.pattern.permute.xlu1 %v1033_v20 }
 0x117   :  { %873 = vmatmul.mubr.f32.gmra.mxu0 %v1079_v8  ;;  %885 = vmatmul.mubr.f32.gmra.mxu1 %v1085_v10 }
 0x118   :  { %735 = vperm.xlu1 %958, %v1089_v11   ;;  %v375_v6 = vpop.permute.xlu1 %374  ;;  %v359_v11 = vpop.permute.xlu0 %358 }
 0x119   :  { %v422_v50 = vmul.f32 %v1344_v31, %v359_v11  ;;  %v426_v61 = vmul.f32 %v1344_v31, %v375_v6 }
 0x11c   :  { %739 = vperm.xlu1 %958, %v1085_v10   ;;  %v1298_v7 = vpop.permute.xlu1 %382  ;;  %v371_v20 = vpop.permute.xlu0 %370 }
 0x11d   :  { %v425_v14 = vmul.f32 %v1344_v31, %v371_v20  ;;  %v428_v3 = vmul.f32 %v1344_v31, %v1298_v7 }
 0x120   :  { %v1300_v12 = vpop.permute.xlu1 %390  ;;  %v1312_v23 = vpop.permute.xlu0 %378 }
 0x121   :  { %v430_v20 = vmul.f32 %v1344_v31, %v1300_v12  ;;  %v427_v7 = vmul.f32 %v1344_v31, %v1312_v23 }
 0x124   :  { %v1302_v9 = vpop.permute.xlu1 %398  ;;  %v387_v34 = vpop.permute.xlu0 %386 }
 0x125   :  { %v429_v6 = vmul.f32 %v1344_v31, %v387_v34  ;;  %v432_v23 = vmul.f32 %v1344_v31, %v1302_v9 }
 0x128   :  { %v1304_v13 = vpop.permute.xlu1 %406  ;;  %v1318_v36 = vpop.permute.xlu0 %394 }
 0x12c   :  { %v1306_v16 = vpop.permute.xlu1 %414  ;;  %v1322_v19 = vpop.permute.xlu0 %402 }
 0x130   :  { %v588_v8 = vpop.permute.xlu1 %587  ;;  %v1326_v42 = vpop.permute.xlu0 %410 }
 0x134   :  { %v592_v17 = vpop.permute.xlu1 %591  ;;  %v680_v37 = vpop.permute.xlu0 %679 }
 0x138   :  { %v1308_v18 = vpop.permute.xlu1 %599  ;;  %v1332_v44 = vpop.permute.xlu0 %695 }
 0x13c   :  { %v684_v10 = vpop.permute.xlu1 %683  ;;  %v1336_v26 = vpop.permute.xlu0 %707 }
 0x140   :  { %v1310_v32 = vpop.permute.xlu1 %687  ;;  %v1340_v47 = vpop.permute.xlu0 %719 }
 0x144   :  { %v584_v48 = vpop.permute.xlu0 %583 }
 0x147   :  { %v1314_v33 = vpop.permute.xlu1 %691 }
 0x148   :  { %v596_v43 = vpop.permute.xlu0 %595 }
 0x14c   :  { %v1316_v35 = vpop.permute.xlu1 %607  ;;  %v604_v1 = vpop.permute.xlu0 %603 }
 0x150   :  { %v1320_v38 = vpop.permute.xlu1 %611 }
 0x155   :  { %v1324_v40 = vpop.permute.xlu1 %699 }
 0x159   :  { %v1328_v27 = vpop.permute.xlu1 %703 }
 0x15f   :  { %v1330_v30 = vpop.permute.xlu1 %619 }
 0x163   :  { %v1334_v45 = vpop.permute.xlu1 %623 }
 0x16a   :  { %v1338_v46 = vpop.permute.xlu1 %711 }
 0x16e   :  { %v1342_v24 = vpop.permute.xlu1 %715 }
 0x173   :  { %v1348_v52 = vpop.permute.xlu1 %631 }
 0x177   :  { %v1353_v63 = vpop.permute.xlu1 %635 }
 0x1cb   :  { %v865_v51 = vpop.f32.mrf.mxu0  ;;  %v877_v39 = vpop.f32.mrf.mxu1 }
 0x1cc   :  { %v509_v28 = vadd.f32 %v865_v51, %v422_v50 }
 0x1cd   :  { %v503_v53 = vpop.f32.mrf.mxu0  ;;  %v543_v54 = vpop.f32.mrf.mxu1 }
 0x1ce   :  { %v504_v56 = vadd.f32 %v503_v53, %v421_v5  ;;  %v647_v29 = vadd.f32 %v588_v8, %v509_v28 }
 0x1cf   :  { %v868_v58 = vpop.f32.mrf.mxu0  ;;  %v880_v49 = vpop.f32.mrf.mxu1 }
 0x1d0   :  { %v646_v59 = vadd.f32 %v584_v48, %v504_v56  ;;  %v519_v62 = vadd.f32 %v868_v58, %v424_v55  ;;  %v663_v57 = vmax.f32 %v647_v29, 0.0  ;;  %v1361_v56 = vpop.permute.xlu1 %723 }
 0x1d1   :  { %v513_v25 = vpop.f32.mrf.mxu0  ;;  %v553_v41 = vpop.f32.mrf.mxu1 }
 0x1d2   :  { %v662_v0 = vmax.f32 %v646_v59, 0.0  ;;  %v649_v2 = vadd.f32 %v596_v43, %v519_v62  ;;  %v514_v21 = vadd.f32 %v513_v25, %v423_v60  ;;  %v743_v5 = vmul.f32 %v684_v10, %v663_v57  ;;  %v616_v25 = vpop.permute.xlu0 %615 }
 0x1d3   :  { %v871_v22 = vpop.f32.mrf.mxu0  ;;  %v883_v50 = vpop.f32.mrf.mxu1  ;;  %v431_v10 = vmul.f32 %v1344_v31, %v1318_v36  ;;  %v549_v59 = vadd.f32 %v877_v39, %v430_v20 }
 0x1d4   :  { %v529_v15 = vadd.f32 %v871_v22, %v426_v61  ;;  %v742_v4 = vmul.f32 %v680_v37, %v662_v0  ;;  %v648_v8 = vadd.f32 %v592_v17, %v514_v21  ;;  %v665_v48 = vmax.f32 %v649_v2, 0.0 }
 0x1d5   :  { %v523_v11 = vpop.f32.mrf.mxu0  ;;  %v544_v37 = vadd.f32 %v543_v54, %v429_v6  ;;  %v563_v62 = vpop.f32.mrf.mxu1  ;;  %v554_v2 = vadd.f32 %v553_v41, %v431_v10  ;;  %v655_v39 = vadd.f32 %v1330_v30, %v549_v59  ;;  %v559_v22 = vadd.f32 %v880_v49, %v432_v23 }
 0x1d6   :  { %v524_v51 = vadd.f32 %v523_v11, %v425_v14  ;;  %v664_v28 = vmax.f32 %v648_v8, 0.0  ;;  %v651_v53 = vadd.f32 %v604_v1, %v529_v15  ;;  %v758_v34 = vadd.f32 %v743_v5, %v742_v4  ;;  %v728_v14 = vpop.permute.xlu1 %727 }
 0x1d7   :  { %v874_v43 = vpop.f32.mrf.mxu0  ;;  %v745_v60 = vmul.f32 %v1314_v33, %v665_v48  ;;  %v654_v57 = vadd.f32 %v616_v25, %v544_v37  ;;  %v433_v33 = vmul.f32 %v1344_v31, %v1322_v19  ;;  %v886_v15 = vpop.f32.mrf.mxu1  ;;  %v656_v8 = vadd.f32 %v1334_v45, %v554_v2 }
 0x1d8   :  { %v650_v17 = vadd.f32 %v1308_v18, %v524_v51  ;;  %v539_v55 = vadd.f32 %v874_v43, %v428_v3  ;;  %v744_v29 = vmul.f32 %v1310_v32, %v664_v28  ;;  %v667_v61 = vmax.f32 %v651_v53, 0.0  ;;  %v628_v3 = vpop.permute.xlu0 %627 }
 0x1d9   :  { %v533_v58 = vpop.f32.mrf.mxu0  ;;  %v670_v41 = vmax.f32 %v654_v57, 0.0  ;;  %v435_v30 = vmul.f32 %v1344_v31, %v1326_v42  ;;  %v671_v49 = vmax.f32 %v655_v39, 0.0  ;;  %v573_v6 = vpop.f32.mrf.mxu1  ;;  %v672_v53 = vmax.f32 %v656_v8, 0.0 }
 0x1da   :  { %v666_v12 = vmax.f32 %v650_v17, 0.0  ;;  %v759_v54 = vadd.f32 %v758_v34, %v744_v29  ;;  %v653_v18 = vadd.f32 %v1320_v38, %v539_v55  ;;  %v534_v0 = vadd.f32 %v533_v58, %v427_v7  ;;  %v644_v28 = vpop.permute.xlu1 %643 }
 0x1db   :  { %v747_v38 = vmul.f32 %v1324_v40, %v667_v61  ;;  %v657_v40 = vadd.f32 %v628_v3, %v559_v22  ;;  %v750_v45 = vmul.f32 %v1338_v46, %v670_v41  ;;  %v574_v20 = vadd.f32 %v573_v6, %v435_v30 }
 0x1dc   :  { %v746_v32 = vmul.f32 %v1332_v44, %v666_v12  ;;  %v760_v21 = vadd.f32 %v759_v54, %v745_v60  ;;  %v652_v36 = vadd.f32 %v1316_v35, %v534_v0  ;;  %v669_v4 = vmax.f32 %v653_v18, 0.0 }
 0x1dd   :  { %v434_v44 = vmul.f32 %v1344_v31, %v1304_v13  ;;  %v564_v35 = vadd.f32 %v563_v62, %v433_v33  ;;  %v436_v13 = vmul.f32 %v1344_v31, %v1306_v16  ;;  %v751_v42 = vmul.f32 %v1342_v24, %v671_v49 }
 0x1de   :  { %v761_v1 = vadd.f32 %v760_v21, %v746_v32  ;;  %v668_v9 = vmax.f32 %v652_v36, 0.0  ;;  %v749_v51 = vmul.f32 %v1336_v26, %v669_v4  ;;  %v673_v37 = vmax.f32 %v657_v40, 0.0  ;;  %v640_v26 = vpop.permute.xlu0 %639  ;;  %v736_v46 = vpop.permute.xlu1 %735 }
 0x1df   :  { %v569_v48 = vadd.f32 %v883_v50, %v434_v44  ;;  %v579_v50 = vadd.f32 %v886_v15, %v436_v13  ;;  %v752_v7 = vmul.f32 %v1340_v47, %v672_v53  ;;  %v660_v31 = vadd.f32 %v640_v26, %v574_v20 }
 0x1e0   :  { %v748_v11 = vmul.f32 %v1328_v27, %v668_v9  ;;  %v762_v19 = vadd.f32 %v761_v1, %v747_v38  ;;  %v658_v27 = vadd.f32 %v1348_v52, %v564_v35  ;;  %v753_v29 = vmul.f32 %v1361_v56, %v673_v37 }
 0x1e1   :  { %v659_v17 = vadd.f32 %v1353_v63, %v569_v48  ;;  %v661_v58 = vadd.f32 %v644_v28, %v579_v50  ;;  %v676_v24 = vmax.f32 %v660_v31, 0.0 }
 0x1e2   :  { %v763_v5 = vadd.f32 %v762_v19, %v748_v11  ;;  %v674_v34 = vmax.f32 %v658_v27, 0.0  ;;  %v732_v59 = vpop.permute.xlu0 %731  ;;  %v740_v54 = vpop.permute.xlu1 %739 }
 0x1e3   :  { %v675_v52 = vmax.f32 %v659_v17, 0.0  ;;  %v677_v63 = vmax.f32 %v661_v58, 0.0  ;;  %v756_v61 = vmul.f32 %v736_v46, %v676_v24 }
 0x1e4   :  { %v764_v43 = vadd.f32 %v763_v5, %v749_v51  ;;  %v754_v60 = vmul.f32 %v728_v14, %v674_v34 }
 0x1e5   :  { %v755_v62 = vmul.f32 %v732_v59, %v675_v52  ;;  %v757_v47 = vmul.f32 %v740_v54, %v677_v63 }
 0x1e6   :  { %v765_v55 = vadd.f32 %v764_v43, %v750_v45 }
 0x1e8   :  { %v766_v16 = vadd.f32 %v765_v55, %v751_v42 }
 0x1ea   :  { %v767_v10 = vadd.f32 %v766_v16, %v752_v7 }
 0x1ec   :  { %v768_v12 = vadd.f32 %v767_v10, %v753_v29 }
 0x1ee   :  { %v769_v25 = vadd.f32 %v768_v12, %v754_v60 }
 0x1f0   :  { %v770_v18 = vadd.f32 %v769_v25, %v755_v62 }
 0x1f2   :  { %v771_v0 = vadd.f32 %v770_v18, %v756_v61 }
 0x1f4   :  { %v772_v23 = vadd.f32 %v771_v0, %v757_v47 }
 0x1f6   :  { %v773_v57 = vrot.slane %v772_v23, 4 }
 0x1f8   :  { %v774_v32 = vadd.f32 %v773_v57, %v772_v23 }
 0x1fa   :  { %v775_v2 = vrot.slane %v774_v32, 2 }
 0x1fc   :  { %v776_v56 = vadd.f32 %v775_v2, %v774_v32 }
 0x1fe   :  { %v777_v21 = vrot.slane %v776_v56, 1 }
 0x200   :  { %v778_v36 = vadd.f32 %v777_v21, %v776_v56 }
 0x202   :  { %779 = vst [vmem:[#allocation7] sm:$0x1] %v778_v36 }
 0x203   :  { %1010 = shalt.err (!%p1007_p0)
}
 0x204   :  { %789 = dma.vmem_to_hbm [thread:$0]  %s787_s1, 16, %s1399_s2, [#allocation4]  }
 0x205   :  { %1023 = dma.done.wait [#allocation4], 16  }
 0x206   :  { %1024 = vsyncadd [#allocation4], 4294967280 }
 0x207   :  { %793 = vsyncpa [#allocation3], 1 }
 0x208   :  { %794 = vsyncpa [#allocation6], 1 }
 0x209   :  { %795 = vsyncpa [#allocation4], 1 }

</bundles_post_ra>
